<compile_context>
chip_gen: v7x
topology: tpu7x:2x2x1
jax: 0.10.0
libtpu: 0.0.40
codegen_flags: <defaults>
</compile_context>

<pallas_src>
import jax
import jax.numpy as jnp
from jax import lax
from jax.experimental import pallas as pl
from jax.experimental.pallas import tpu as pltpu

_LANE = 128
_SUB = 8


def _head_kernel(x_ref, w_ref, b_ref, o_ref, acc_ref):
    # x_ref:   (TB, THW, C)  backbone features, channels-last, native dtype
    # w_ref:   (C, NP)       Linear weight.T * (1/HW), lane-padded, compute dtype
    # b_ref:   (1, NP) f32   Linear bias, lane-padded
    # o_ref:   (TB, NP) f32  logits (class dim lane-padded)
    # acc_ref: (TB, C) f32   spatial-sum accumulator (lives across the k axis)
    k = pl.program_id(1)

    @pl.when(k == 0)
    def _init():
        acc_ref[...] = jnp.zeros_like(acc_ref)

    tb, thw, c = x_ref.shape

    # Partial spatial sum in f32 WITHOUT materializing an f32 copy of the whole
    # tile: accumulate 8-row (sublane-aligned) slabs into a (TB, C) f32 value.
    n_slabs, rem = thw // _SUB, thw % _SUB
    part = jnp.zeros((tb, c), jnp.float32)
    if n_slabs > 0:
        def _slab(i, p):
            s = pl.multiple_of(i * _SUB, _SUB)
            return p + jnp.sum(x_ref[:, pl.ds(s, _SUB), :], axis=1,
                               dtype=jnp.float32)
        part = lax.fori_loop(0, n_slabs, _slab, part,
                             unroll=True if n_slabs <= 16 else 8)
    if rem:
        part = part + jnp.sum(x_ref[:, pl.ds(n_slabs * _SUB, rem), :], axis=1,
                              dtype=jnp.float32)
    acc_ref[...] += part

    @pl.when(k == pl.num_programs(1) - 1)
    def _finalize():
        # nn.Dropout is the identity in eval mode; the 1/HW pool scale is
        # folded into w_ref. bf16 x bf16 MXU matmul with f32 accumulation.
        pooled = acc_ref[...].astype(w_ref.dtype)
        o_ref[...] = jnp.dot(pooled, w_ref[...],
                             preferred_element_type=jnp.float32) + b_ref[...]


def _choose_tiles(B, HW, C, itemsize, block_b, feat_buf_bytes):
    """Pick (batch tile, spatial tile).

    The batch tile is the sublane dim of the OUTPUT block, so it must be a
    multiple of 8 or the full batch; for B > 8 we also guarantee >= 2 batch
    blocks so both v7x TensorCores get work on the 'parallel' axis.
    The spatial tile keeps one feature block within `feat_buf_bytes` per
    pipeline buffer (full HW whenever it already fits).
    """
    if B <= _SUB:
        tb = B                      # full batch: single block (tiny problem)
    else:
        tb = min(block_b, _SUB * pl.cdiv(pl.cdiv(B, 2), _SUB))
        tb = max(_SUB, (tb // _SUB) * _SUB)

    def fits(tb_, thw_):
        return tb_ * thw_ * C * itemsize <= feat_buf_bytes

    thw = HW
    if not fits(tb, thw):
        # Largest 8-aligned divisor of HW that fits: no ragged block on the
        # reduction axis (garbage tail rows would pollute the spatial sum).
        best = 0
        for cand in range(_SUB, HW, _SUB):
            if HW % cand == 0 and cand > best and fits(tb, cand):
                best = cand
        if best:
            thw = best
        else:
            # No clean spatial split (e.g. HW = 49): shrink the batch tile
            # instead, keeping it a multiple of 8.
            while tb > _SUB and not fits(tb, HW):
                tb = max(_SUB, ((tb // 2) // _SUB) * _SUB)
    return tb, thw


def make_densenet_custom_head(weight, bias, feat_hw, *,
                              compute_dtype=jnp.bfloat16,
                              block_b=128,
                              feat_buf_bytes=12 * 1024 * 1024):
    """Build the fused pool + (eval) dropout + Linear head of DensenetCustom.

    weight:        (n_class, feat_size) nn.Linear weight.
    bias:          (n_class,)           nn.Linear bias.
    feat_hw:       H*W of the backbone feature map (pool scale folded into w).
    compute_dtype: MXU input dtype for the Linear (accumulation is f32).
    block_b:       max batch rows per grid step.
    feat_buf_bytes:per-buffer VMEM budget for one feature tile (the pipeline
                   double-buffers it).
    Returns head(feats_nhwc), feats_nhwc of shape (B, H, W, feat_size).
    """
    n_class, C = weight.shape
    NP = max(_LANE, pl.cdiv(n_class, _LANE) * _LANE)

    # Prepared ONCE (hoisted out of the per-call path): transpose, fold the
    # 1/HW average-pool scale, lane-pad the class dim (dense unmasked output
    # stores), cast to the compute dtype. Bias stays f32 (added post-matmul).
    w_t = (jnp.zeros((C, NP), jnp.float32)
           .at[:, :n_class].set(weight.astype(jnp.float32).T / float(feat_hw))
           .astype(compute_dtype))
    b2 = jnp.zeros((1, NP), jnp.float32).at[:, :n_class].set(
        bias.astype(jnp.float32))

    @jax.jit
    def head(feats_nhwc):
        B, H, W, C_in = feats_nhwc.shape
        assert C_in == C and H * W == feat_hw
        HW = H * W
        # Free reshape: minor (channel) dim unchanged, no data movement.
        x = feats_nhwc.reshape(B, HW, C)
        itemsize = x.dtype.itemsize

        tb, thw = _choose_tiles(B, HW, C, itemsize, block_b, feat_buf_bytes)
        nb = pl.cdiv(B, tb)   # ragged last batch block: OOB rows never written
        nk = HW // thw        # spatial reduction axis (exact split)

        # VMEM footprint: double-buffered feature/output tiles, weight + bias
        # buffers, f32 accumulator and transient f32 slab. Explicit limit with
        # headroom, capped below v7x's 64 MiB physical VMEM.
        est = (2 * tb * thw * C * itemsize
               + 2 * C * NP * jnp.dtype(compute_dtype).itemsize + 2 * NP * 4
               + 2 * tb * NP * 4
               + tb * C * 4
               + tb * _SUB * C * 4)
        vmem_limit = int(min(48 * 2**20, max(16 * 2**20, 1.5 * est)))

        out = pl.pallas_call(
            _head_kernel,
            out_shape=jax.ShapeDtypeStruct((B, NP), jnp.float32),
            grid=(nb, nk),
            in_specs=[
                pl.BlockSpec((tb, thw, C), lambda i, k: (i, k, 0)),
                pl.BlockSpec((C, NP), lambda i, k: (0, 0)),
                pl.BlockSpec((1, NP), lambda i, k: (0, 0)),
            ],
            out_specs=pl.BlockSpec((tb, NP), lambda i, k: (i, 0)),
            scratch_shapes=[pltpu.VMEM((tb, C), jnp.float32)],
            compiler_params=pltpu.CompilerParams(
                dimension_semantics=("parallel", "arbitrary"),
                vmem_limit_bytes=vmem_limit),
        )(x, w_t, b2)

        out = out[:, :n_class]
        # Match PyTorch `.squeeze()` before the Linear: B == 1 gives (n_class,).
        # TODO(synk): the n_class == 1 squeeze edge case is not handled.
        if B == 1:
            out = out[0]
        return out

    return head


if __name__ == "__main__":
    # Small deterministic shapes: batch=12 (ragged last batch block + 2 batch
    # grid steps), 8x8 spatial, 128 channels, 10 classes.
    B, H, W, C = 12, 8, 8, 128
    n_class = 10

    key = jax.random.PRNGKey(0)
    k_feat, k_w, k_b = jax.random.split(key, 3)

    # Stand-in for the backbone output, channels-last, native bf16.
    feats = jax.random.normal(k_feat, (B, H, W, C), dtype=jnp.float32).astype(
        jnp.bfloat16)

    # nn.Linear(feat_size, n_class) init: U(-1/sqrt(C), 1/sqrt(C)).
    bound = 1.0 / (C ** 0.5)
    weight = jax.random.uniform(k_w, (n_class, C), minval=-bound, maxval=bound,
                                dtype=jnp.float32)
    bias = jax.random.uniform(k_b, (n_class,), minval=-bound, maxval=bound,
                              dtype=jnp.float32)

    # Reference (PyTorch head semantics, eval mode) in plain JAX.
    pooled_ref = feats.astype(jnp.float32).reshape(B, H * W, C).mean(axis=1)
    ref = pooled_ref @ weight.T + bias

    head = make_densenet_custom_head(weight, bias, feat_hw=H * W)
    out = jax.block_until_ready(head(feats))
    assert out.shape == (B, n_class)
    # bf16 MXU path (bf16 pooled x bf16 weight, f32 accumulation) tolerance.
    assert jnp.allclose(out, ref, atol=5e-3, rtol=5e-3)

    # Exercise the spatial-reduction grid axis (tiny budget forces nk > 1).
    head_split = make_densenet_custom_head(weight, bias, feat_hw=H * W,
                                           feat_buf_bytes=64 * 1024)
    out2 = jax.block_until_ready(head_split(feats))
    assert jnp.allclose(out2, ref, atol=5e-3, rtol=5e-3)

    # Exercise the B == 1 `.squeeze()` path.
    out1 = jax.block_until_ready(head(feats[:1]))
    assert out1.shape == (n_class,)
    assert jnp.allclose(out1, ref[0], atol=5e-3, rtol=5e-3)

    print("KERNEL_OK")
</pallas_src>

<mosaic_0001>
module attributes {stable_mosaic.version = 11 : i64} {
  func.func @_head_kernel(%arg0: i32, %arg1: i32, %arg2: memref<8x64x128xbf16, #tpu.memory_space<vmem>>, %arg3: memref<128x128xbf16, #tpu.memory_space<vmem>>, %arg4: memref<1x128xf32, #tpu.memory_space<vmem>>, %arg5: memref<8x128xf32, #tpu.memory_space<vmem>>, %arg6: memref<8x128xf32, #tpu.memory_space<vmem>>) attributes {dimension_semantics = [#tpu.dimension_semantics<parallel>, #tpu.dimension_semantics<arbitrary>], iteration_bounds = array<i64: 2, 1>, scalar_prefetch = 0 : i64, scratch_operands = 1 : i64, tpu.core_type = #tpu.core_type<tc>, window_params = [{transform_indices = @transform_0, window_bounds = array<i64: 8, 64, 128>}, {pipeline_mode = #tpu.pipeline_mode<synchronous>, transform_indices = @transform_1, window_bounds = array<i64: 128, 128>}, {pipeline_mode = #tpu.pipeline_mode<synchronous>, transform_indices = @transform_2, window_bounds = array<i64: 1, 128>}, {transform_indices = @transform_3, window_bounds = array<i64: 8, 128>}]} {
    %c0_i32 = arith.constant 0 : i32
    %0 = arith.cmpi eq, %arg1, %c0_i32 : i32
    %1 = arith.extui %0 : i1 to i32
    %c0_i32_0 = arith.constant 0 : i32
    %2 = arith.cmpi ne, %1, %c0_i32_0 : i32
    scf.if %2 {
      %cst_39 = arith.constant 0.000000e+00 : f32
      %66 = vector.broadcast %cst_39 : f32 to vector<8x128xf32>
      %c0_40 = arith.constant 0 : index
      %c0_41 = arith.constant 0 : index
      %67 = vector.load %arg6[%c0_40, %c0_41] : memref<8x128xf32, #tpu.memory_space<vmem>>, vector<8x128xf32>
      tpu.vector_store %arg6[%c0_40, %c0_41], %66 {strides = array<i32>} : memref<8x128xf32, #tpu.memory_space<vmem>>, vector<8x128xf32>,
    } else {
    }
    %cst = arith.constant 0.000000e+00 : f32
    %3 = vector.broadcast %cst : f32 to vector<8x128xf32>
    %c0_i32_1 = arith.constant 0 : i32
    %c8_i32 = arith.constant 8 : i32
    %4 = arith.muli %c0_i32_1, %c8_i32 : i32
    %5 = tpu.assume_multiple %4, 8 : i32
    %c0 = arith.constant 0 : index
    %6 = arith.index_cast %5 : i32 to index
    %c0_2 = arith.constant 0 : index
    %7 = vector.load %arg2[%c0, %6, %c0_2] : memref<8x64x128xbf16, #tpu.memory_space<vmem>>, vector<8x8x128xbf16>
    %8 = arith.extf %7 : vector<8x8x128xbf16> to vector<8x8x128xf32>
    %cst_3 = arith.constant dense<0.000000e+00> : vector<8x128xf32>
    %9 = vector.multi_reduction <add>, %8, %cst_3 [1] : vector<8x8x128xf32> to vector<8x128xf32>
    %10 = arith.addf %3, %9 : vector<8x128xf32>
    %c1_i32 = arith.constant 1 : i32
    %c8_i32_4 = arith.constant 8 : i32
    %11 = arith.muli %c1_i32, %c8_i32_4 : i32
    %12 = tpu.assume_multiple %11, 8 : i32
    %c0_5 = arith.constant 0 : index
    %13 = arith.index_cast %12 : i32 to index
    %c0_6 = arith.constant 0 : index
    %14 = vector.load %arg2[%c0_5, %13, %c0_6] : memref<8x64x128xbf16, #tpu.memory_space<vmem>>, vector<8x8x128xbf16>
    %15 = arith.extf %14 : vector<8x8x128xbf16> to vector<8x8x128xf32>
    %cst_7 = arith.constant dense<0.000000e+00> : vector<8x128xf32>
    %16 = vector.multi_reduction <add>, %15, %cst_7 [1] : vector<8x8x128xf32> to vector<8x128xf32>
    %17 = arith.addf %10, %16 : vector<8x128xf32>
    %c2_i32 = arith.constant 2 : i32
    %c8_i32_8 = arith.constant 8 : i32
    %18 = arith.muli %c2_i32, %c8_i32_8 : i32
    %19 = tpu.assume_multiple %18, 8 : i32
    %c0_9 = arith.constant 0 : index
    %20 = arith.index_cast %19 : i32 to index
    %c0_10 = arith.constant 0 : index
    %21 = vector.load %arg2[%c0_9, %20, %c0_10] : memref<8x64x128xbf16, #tpu.memory_space<vmem>>, vector<8x8x128xbf16>
    %22 = arith.extf %21 : vector<8x8x128xbf16> to vector<8x8x128xf32>
    %cst_11 = arith.constant dense<0.000000e+00> : vector<8x128xf32>
    %23 = vector.multi_reduction <add>, %22, %cst_11 [1] : vector<8x8x128xf32> to vector<8x128xf32>
    %24 = arith.addf %17, %23 : vector<8x128xf32>
    %c3_i32 = arith.constant 3 : i32
    %c8_i32_12 = arith.constant 8 : i32
    %25 = arith.muli %c3_i32, %c8_i32_12 : i32
    %26 = tpu.assume_multiple %25, 8 : i32
    %c0_13 = arith.constant 0 : index
    %27 = arith.index_cast %26 : i32 to index
    %c0_14 = arith.constant 0 : index
    %28 = vector.load %arg2[%c0_13, %27, %c0_14] : memref<8x64x128xbf16, #tpu.memory_space<vmem>>, vector<8x8x128xbf16>
    %29 = arith.extf %28 : vector<8x8x128xbf16> to vector<8x8x128xf32>
    %cst_15 = arith.constant dense<0.000000e+00> : vector<8x128xf32>
    %30 = vector.multi_reduction <add>, %29, %cst_15 [1] : vector<8x8x128xf32> to vector<8x128xf32>
    %31 = arith.addf %24, %30 : vector<8x128xf32>
    %c4_i32 = arith.constant 4 : i32
    %c8_i32_16 = arith.constant 8 : i32
    %32 = arith.muli %c4_i32, %c8_i32_16 : i32
    %33 = tpu.assume_multiple %32, 8 : i32
    %c0_17 = arith.constant 0 : index
    %34 = arith.index_cast %33 : i32 to index
    %c0_18 = arith.constant 0 : index
    %35 = vector.load %arg2[%c0_17, %34, %c0_18] : memref<8x64x128xbf16, #tpu.memory_space<vmem>>, vector<8x8x128xbf16>
    %36 = arith.extf %35 : vector<8x8x128xbf16> to vector<8x8x128xf32>
    %cst_19 = arith.constant dense<0.000000e+00> : vector<8x128xf32>
    %37 = vector.multi_reduction <add>, %36, %cst_19 [1] : vector<8x8x128xf32> to vector<8x128xf32>
    %38 = arith.addf %31, %37 : vector<8x128xf32>
    %c5_i32 = arith.constant 5 : i32
    %c8_i32_20 = arith.constant 8 : i32
    %39 = arith.muli %c5_i32, %c8_i32_20 : i32
    %40 = tpu.assume_multiple %39, 8 : i32
    %c0_21 = arith.constant 0 : index
    %41 = arith.index_cast %40 : i32 to index
    %c0_22 = arith.constant 0 : index
    %42 = vector.load %arg2[%c0_21, %41, %c0_22] : memref<8x64x128xbf16, #tpu.memory_space<vmem>>, vector<8x8x128xbf16>
    %43 = arith.extf %42 : vector<8x8x128xbf16> to vector<8x8x128xf32>
    %cst_23 = arith.constant dense<0.000000e+00> : vector<8x128xf32>
    %44 = vector.multi_reduction <add>, %43, %cst_23 [1] : vector<8x8x128xf32> to vector<8x128xf32>
    %45 = arith.addf %38, %44 : vector<8x128xf32>
    %c6_i32 = arith.constant 6 : i32
    %c8_i32_24 = arith.constant 8 : i32
    %46 = arith.muli %c6_i32, %c8_i32_24 : i32
    %47 = tpu.assume_multiple %46, 8 : i32
    %c0_25 = arith.constant 0 : index
    %48 = arith.index_cast %47 : i32 to index
    %c0_26 = arith.constant 0 : index
    %49 = vector.load %arg2[%c0_25, %48, %c0_26] : memref<8x64x128xbf16, #tpu.memory_space<vmem>>, vector<8x8x128xbf16>
    %50 = arith.extf %49 : vector<8x8x128xbf16> to vector<8x8x128xf32>
    %cst_27 = arith.constant dense<0.000000e+00> : vector<8x128xf32>
    %51 = vector.multi_reduction <add>, %50, %cst_27 [1] : vector<8x8x128xf32> to vector<8x128xf32>
    %52 = arith.addf %45, %51 : vector<8x128xf32>
    %c7_i32 = arith.constant 7 : i32
    %c8_i32_28 = arith.constant 8 : i32
    %53 = arith.muli %c7_i32, %c8_i32_28 : i32
    %54 = tpu.assume_multiple %53, 8 : i32
    %c0_29 = arith.constant 0 : index
    %55 = arith.index_cast %54 : i32 to index
    %c0_30 = arith.constant 0 : index
    %56 = vector.load %arg2[%c0_29, %55, %c0_30] : memref<8x64x128xbf16, #tpu.memory_space<vmem>>, vector<8x8x128xbf16>
    %57 = arith.extf %56 : vector<8x8x128xbf16> to vector<8x8x128xf32>
    %cst_31 = arith.constant dense<0.000000e+00> : vector<8x128xf32>
    %58 = vector.multi_reduction <add>, %57, %cst_31 [1] : vector<8x8x128xf32> to vector<8x128xf32>
    %59 = arith.addf %52, %58 : vector<8x128xf32>
    %c8_i32_32 = arith.constant 8 : i32
    %c0_33 = arith.constant 0 : index
    %c0_34 = arith.constant 0 : index
    %60 = vector.load %arg6[%c0_33, %c0_34] : memref<8x128xf32, #tpu.memory_space<vmem>>, vector<8x128xf32>
    %61 = arith.addf %60, %59 : vector<8x128xf32>
    %c0_35 = arith.constant 0 : index
    %c0_36 = arith.constant 0 : index
    %62 = vector.load %arg6[%c0_35, %c0_36] : memref<8x128xf32, #tpu.memory_space<vmem>>, vector<8x128xf32>
    tpu.vector_store %arg6[%c0_35, %c0_36], %61 {strides = array<i32>} : memref<8x128xf32, #tpu.memory_space<vmem>>, vector<8x128xf32>,
    %c0_i32_37 = arith.constant 0 : i32
    %63 = arith.cmpi eq, %arg1, %c0_i32_37 : i32
    %64 = arith.extui %63 : i1 to i32
    %c0_i32_38 = arith.constant 0 : i32
    %65 = arith.cmpi ne, %64, %c0_i32_38 : i32
    scf.if %65 {
      %c0_39 = arith.constant 0 : index
      %c0_40 = arith.constant 0 : index
      %66 = vector.load %arg6[%c0_39, %c0_40] : memref<8x128xf32, #tpu.memory_space<vmem>>, vector<8x128xf32>
      %67 = arith.truncf %66 : vector<8x128xf32> to vector<8x128xbf16>
      %c0_41 = arith.constant 0 : index
      %c0_42 = arith.constant 0 : index
      %68 = vector.load %arg3[%c0_41, %c0_42] : memref<128x128xbf16, #tpu.memory_space<vmem>>, vector<128x128xbf16>
      %cst_43 = arith.constant dense<0.000000e+00> : vector<8x128xf32>
      %69 = tpu.matmul %67, %68, %cst_43 {dimension_numbers = #tpu.dot_dimension_numbers<[1], [0], [0], [1], [0, 0, 1, 1], [], []>} : vector<8x128xbf16>, vector<128x128xbf16>, vector<8x128xf32> -> vector<8x128xf32>
      %c0_44 = arith.constant 0 : index
      %c0_45 = arith.constant 0 : index
      %70 = vector.load %arg4[%c0_44, %c0_45] : memref<1x128xf32, #tpu.memory_space<vmem>>, vector<1x128xf32>
      %71 = vector.broadcast %70 : vector<1x128xf32> to vector<8x128xf32>
      %72 = arith.addf %69, %71 : vector<8x128xf32>
      %c0_46 = arith.constant 0 : index
      %c0_47 = arith.constant 0 : index
      %73 = vector.load %arg5[%c0_46, %c0_47] : memref<8x128xf32, #tpu.memory_space<vmem>>, vector<8x128xf32>
      tpu.vector_store %arg5[%c0_46, %c0_47], %72 {strides = array<i32>} : memref<8x128xf32, #tpu.memory_space<vmem>>, vector<8x128xf32>,
    } else {
    }
    return
  }
  func.func @transform_0(%arg0: i32, %arg1: i32) -> (i32, i32, i32) {
    %c0_i32 = arith.constant 0 : i32
    %c0_i32_0 = arith.constant 0 : i32
    return %arg0, %arg1, %c0_i32 : i32, i32, i32
  }
  func.func @transform_1(%arg0: i32, %arg1: i32) -> (i32, i32) {
    %c0_i32 = arith.constant 0 : i32
    %c0_i32_0 = arith.constant 0 : i32
    %c0_i32_1 = arith.constant 0 : i32
    return %c0_i32, %c0_i32_0 : i32, i32
  }
  func.func @transform_2(%arg0: i32, %arg1: i32) -> (i32, i32) {
    %c0_i32 = arith.constant 0 : i32
    %c0_i32_0 = arith.constant 0 : i32
    %c0_i32_1 = arith.constant 0 : i32
    return %c0_i32, %c0_i32_0 : i32, i32
  }
  func.func @transform_3(%arg0: i32, %arg1: i32) -> (i32, i32) {
    %c0_i32 = arith.constant 0 : i32
    %c0_i32_0 = arith.constant 0 : i32
    return %arg0, %c0_i32 : i32, i32
  }
}

</mosaic_0001>

<bundles_post_ra>
// kernel: head.1
= control target key start
LH: loop header
LB: loop body
LE: loop exit
PB: predicated region body
PF: predicated region fallthrough
CT: control target
= control target key end

     0   :  { %8 = vsyncpa [#allocation4], 0  ;;  %s2015_s0 = inlined_call_operand.hbm [shape: bf16[12,64,128], index: 0, kind: input, shape index: {}]   ;;  %s2016_s1 = inlined_call_operand.hbm [shape: bf16[128,128], index: 1, kind: input, shape index: {}]   ;;  %s2017_s2 = inlined_call_operand.vmem [shape: f32[1,128], index: 2, kind: input, shape index: {}]   ;;  %s2018_s3 = inlined_call_operand.hbm [shape: f32[12,128], index: 3, kind: output, shape index: {}]  }
   0x1   :  { %10 = vsyncpa [#allocation4 + $0x1], 0 }
   0x2   :  { %11 = vsyncpa [#allocation7], 0 }
   0x3   :  { %12 = vsyncpa [#allocation5], 0 }
   0x4   :  { %14 = vsyncpa [#allocation5 + $0x1], 0  ;;  %s1449_s12 = smov 0   ;;  %s1451_s13 = smov 0  }
   0x5   :  { %s1453_s14 = smov 0   ;;  %s1455_s15 = smov 0  }
   0x6   :  { %s1457_s16 = smov 0   ;;  %s1459_s17 = smov 0  }
   0x7 LB: > { %s1073_s18 = sadd.s32 4294967295, %s1418_s17   ;;  %s1074_s19 = sadd.s32 4294967294, %s1418_s17   ;;  %s1418_s17 = sphi %s1459_s17, %s20_s17   ;;  %s1414_s16 = sphi %s1457_s16, %s2041_s16   ;;  %s1410_s15 = sphi %s1455_s15, %s2040_s15   ;;  %s1406_s14 = sphi %s1453_s14, %s2039_s14   ;;  %s1402_s13 = sphi %s1451_s13, %s2038_s13   ;;  %s1398_s12 = sphi %s1449_s12, %s2037_s12  }
   0x8   : > { %s32_s20 = sadd.s32 1, %s1414_s16  ;;  %s41_s21 = sadd.s32 1, %s1406_s14 }
   0x9   : > { %p34_p0 = scmp.ge.s32.totalorder %s32_s20, 2  ;;  %p48_p1 = scmp.ne.s32.totalorder %s1406_s14, %s1402_s13 }
   0xa   : > { %p49_p2 = scmp.eq.s32.totalorder %s1418_s17, 0  ;;  %p54_p3 = scmp.ne.s32.totalorder %s1402_s13, %s1398_s12 }
   0xb   : > { %s2043_s20 = smov (%p34_p0, %s32_s20), 0  ;;  %p1494_p5 = scmp.eq.s32.totalorder %s1073_s18, 0 }
   0xc   : > { %p1490_p4 = por %p49_p2, %p48_p1  ;;  %s36_s24 = ssub.s32 %s1414_s16, %s2043_s20 }
   0xd   : > { %s2025_s23 = scalar_select %p1494_p5, 1, 0 }
   0xe   : > { %s2024_s22 = scalar_select %p1490_p4, 1, 0 }
   0xf   : > { %p120_p6 = scmp.eq.s32.totalorder %s1073_s18, 1  ;;  %p39_p7 = scmp.eq.s32.totalorder %s36_s24, 0 }
  0x10   : > { %p1502_p8 = por %p1494_p5, %p54_p3  ;;  %p126_p10 = scmp.eq.s32.totalorder %s1074_s19, 1 }
  0x11   : > { %p1506_p9 = por %p120_p6, %p48_p1  ;;  %p1075_p12 = scmp.ge.s32.totalorder %s1418_s17, 1 }
  0x12   : > { %s2026_s25 = scalar_select %p1502_p8, 1, 0 }
  0x13   : > { %s2027_s26 = scalar_select %p1506_p9, 1, 0 }
  0x14   : > { %s1511_s27 = scalar_select %p39_p7, %s1406_s14, %s41_s21  }
  0x15   : > { %p1513_p11 = por %p126_p10, %p54_p3  ;;  %p133_p13 = scmp.lt.s32.totalorder %s1418_s17, 3 }
  0x16   : > { %s1420_s30 = smov [#allocation6]   ;;  %s1276_s8 = scalar_lea.hbm %s2016_s1, 1024 }
  0x17   : > { %s2028_s28 = scalar_select %p1513_p11, 1, 0 }
  0x18   : > { %p1519_p0 = pnand %p1075_p12, %p133_p13  ;;  %s145_s4 = sshll.u32 %s1420_s30, 4  ;;  %s146_s4 = int_to_ptr.vmem [resolvable:$true] %s145_s4 }
  0x19   : > { %p1277_p3 = scmp.ne.s32.totalorder %s2016_s1, %s1276_s8  ;;  %p1283_p12 = scmp.lt.u32.totalorder %s1276_s8, %s2016_s1 }
  0x1a   : > { %s2029_s29 = scalar_select %p1519_p0, 1, 0 }
  0x1b   : > { %p1202_p1 = pneg %p1519_p0 }
  0x1d   : > { %p1527_p2 = pnand %p1202_p1, %p1494_p5 }
  0x1f   : > { %p1278_p6 = pneg %p1527_p2 }
  0x21   : > { %p1279_p7 = pnand %p1278_p6, %p1277_p3 }
  0x23   : > { %p1280_p10 = pneg %p1279_p7 }
  0x25   : > { %p1285_p13 = pnand %p1283_p12, %p1280_p10 }
  0x27   : > { %1288 = shalt.err (!%p1285_p13)
}
  0x28   : > { %s1289_s19 = scalar_lea.vmem %s146_s4, 1024  ;;  %p1297_p5 = scmp.lt.s32.totalorder %s146_s4, %s146_s4 }
  0x29   : > { %p1290_p1 = scmp.ne.s32.totalorder %s146_s4, %s1289_s19  ;;  %p1298_p8 = scmp.lt.s32.totalorder %s1289_s19, %s1289_s19 }
  0x2b   : > { %p1292_p11 = pnand %p1290_p1, %p1278_p6  ;;  %p1299_p0 = por %p1298_p8, %p1297_p5 }
  0x2d   : > { %p1293_p9 = pneg %p1292_p11 }
  0x2f   : > { %p1300_p4 = pnand %p1299_p0, %p1293_p9 }
  0x31   : > { %1303 = shalt.err (!%p1300_p4)
}
  0x32   : > { %s1421_s21 = smov 64   ;;  %s1422_s24 = smov 4  }
  0x33   : > { %1205 = dma.hbm_to_vmem [thread:$0]  (!%p1527_p2), %s2016_s1, 1024, %s146_s4, [#allocation7], %s1421_s21, %s1421_s21, %s1422_s24  }
  0x34   : > { %p1077_p3 = scmp.ge.s32.totalorder %s1418_s17, 2 }
  0x35   : > { %p2031_p11 = scmp.ne.s32.totalorder (!%p1077_p3), %s2024_s22, 0 }
  0x36   : > { %158 = sbr.rel (%p1077_p3) target bundleno = 96 (0x60), region = 24 }
  0x3d   : > { %161 = sbr.rel (!%p2031_p11) target bundleno = 96 (0x60), region = 28  ;;  %s162_s7 = sand.u32 (%p2031_p11), 1, %s1406_s14  }
  0x3e   : > { %s1079_s8 = sshll.u32 (%p2031_p11), %s1414_s16, 3  ;;  %s1078_s9 = sshll.u32 (%p2031_p11), %s162_s7, 8 }
  0x3f   : > { %s169_s10 = ssub.s32 (%p2031_p11), 12, %s1079_s8  ;;  %s1557_s11 = scalar_lea.sflag (%p2031_p11), [#allocation4], %s162_s7 }
  0x40   : > { %p170_p4 = scmp.lt.s32.totalorder (%p2031_p11), %s169_s10, 8  ;;  %s166_s18 = scalar_lea.vmem (%p2031_p11), [#allocation3], %s1078_s9 }
  0x44   : > { %s2045_s10 = smov (!%p170_p4, %s169_s10), 8 }
  0x45   : > { %s1554_s5 = sshll.u32 %s2045_s10, 9 }
  0x46   : > { %s175_s4 = ssub.s32 4096, %s1554_s5 }
  0x47   : > { %176 = vsyncadd %s1557_s11, %s175_s4  ;;  %p1082_p5 = scmp.ne.s32.totalorder %s1554_s5, 0  ;;  %s1163_s22 = sshll.u32 %s1414_s16, 12 }
  0x48   : > { %s1565_s24 = scalar_lea.hbm %s2015_s0, %s1163_s22  ;;  %s184_s30 = sshll.u32 %s166_s18, 4  ;;  %s1567_s30 = int_to_ptr.vmem [resolvable:$true] %s184_s30 }
  0x49   : > { %s1304_s6 = scalar_lea.hbm %s1565_s24, %s1554_s5  ;;  %s1308_s9 = scalar_lea.hbm %s2015_s0, 6144 }
  0x4a   : > { %p1305_p8 = scmp.ne.s32.totalorder %s1565_s24, %s1304_s6  ;;  %p1309_p2 = scmp.lt.u32.totalorder %s1565_s24, %s2015_s0 }
  0x4b   : > { %p1310_p6 = scmp.lt.u32.totalorder %s1308_s9, %s1304_s6  ;;  %p1312_p10 = scmp.lt.u32.totalorder %s1304_s6, %s1565_s24 }
  0x4c   : > { %p1306_p9 = pnand %p1305_p8, %p1082_p5 }
  0x4d   : > { %p1311_p7 = por %p1310_p6, %p1309_p2 }
  0x4e   : > { %p1307_p0 = pneg %p1306_p9 }
  0x4f   : > { %p1313_p12 = por %p1312_p10, %p1311_p7 }
  0x51   : > { %p1314_p13 = pnand %p1313_p12, %p1307_p0 }
  0x53   : > { %1317 = shalt.err (!%p1314_p13)
}
  0x54   : > { %s1318_s18 = scalar_lea.vmem %s1567_s30, %s1554_s5  ;;  %s1423_s22 = smov [#allocation3]  }
  0x55   : > { %p1319_p1 = scmp.ne.s32.totalorder %s1567_s30, %s1318_s18  ;;  %s1322_s19 = sshll.u32 %s1423_s22, 4  ;;  %s1323_s19 = int_to_ptr.vmem [resolvable:$false] %s1322_s19 }
  0x56   : > { %s1324_s21 = scalar_lea.vmem %s1323_s19, 8192  ;;  %p1325_p8 = scmp.lt.s32.totalorder %s1567_s30, %s1323_s19 }
  0x57   : > { %p1320_p11 = pnand %p1319_p1, %p1082_p5  ;;  %p1326_p9 = scmp.lt.s32.totalorder %s1324_s21, %s1318_s18 }
  0x59   : > { %p1321_p4 = pneg %p1320_p11  ;;  %p1327_p2 = por %p1326_p9, %p1325_p8 }
  0x5b   : > { %p1328_p6 = pnand %p1327_p2, %p1321_p4 }
  0x5d   : > { %1331 = shalt.err (!%p1328_p6)
}
  0x5e   : > { %s1424_s6 = smov 64   ;;  %s1425_s7 = smov 4  }
  0x5f   : > { %190 = dma.hbm_to_vmem [thread:$0]  (%p1082_p5), %s1565_s24, %s1554_s5, %s1567_s30, %s1557_s11, %s1424_s6, %s1424_s6, %s1425_s7  }
  0x60 PF: > { %p2032_p0 = scmp.ne.s32.totalorder %s2029_s29, 0 }
  0x61   : > { %s1597_s8 = sand.u32 (!%p2032_p0), 1, %s1402_s13   ;;  %p2033_p7 = scmp.ne.s32.totalorder (!%p2032_p0), %s2026_s25, 0 }
  0x62   : > { %196 = sbr.rel (%p2032_p0) target bundleno = 476 (0x1dc), region = 32  ;;  %s1089_s9 = sshll.u32 (!%p2032_p0), %s1597_s8, 8 }
  0x63   : > { %s199_s10 = scalar_lea.sflag (!%p2032_p0), [#allocation4], %s1597_s8  ;;  %s1601_s4 = scalar_lea.vmem (!%p2032_p0), [#allocation3], %s1089_s9 }
  0x69   : > { %1385 = dma.done.wait (%p2033_p7), %s199_s10, 4096  }
  0x6a   : > { %1387 = vsyncadd (%p2033_p7), %s199_s10, 4294963200  ;;  %p2034_p5 = scmp.ne.s32.totalorder %s2025_s23, 0 }
  0x6c   : > { %1389 = dma.done.wait (%p2034_p5), [#allocation7], 1024  }
  0x6d   : > { %1391 = vsyncadd (%p2034_p5), [#allocation7], 4294966272  ;;  %v1426_v0 = vmov 0.0   ;;  %vm1427_vm0 = vmmov 0   ;;  %v1268_v1 = vld [vmem:[#allocation6] sm:$0xff]   ;;  %v1269_v2 = vld [vmem:[#allocation6 + $0x8] sm:$0xff]  }
  0x6e   : > { %1175 = vmatprep.subr.bf16.mxu0 %v1426_v0  ;;  %1191 = vmatprep.mubr.msk.bf16.mxu0 %vm1427_vm0, %v1426_v0  ;;  %v1270_v3 = vld [vmem:[#allocation6 + $0x10] sm:$0xff]   ;;  %v1616_v4 = vld [vmem:[%s1601_s4] sm:$0xff]   ;;  %v1271_v14 = vld [vmem:[#allocation6 + $0x18] sm:$0xff]   ;;  %vm834_vm1 = vcmask 1041409   ;;  %vm836_vm2 = vcmask 1042434   ;;  %vm838_vm3 = vcmask 1043459  }
  0x6f   : > { %1176 = vmatpush3.bf16.msra.mxu0 %v1268_v1  ;;  %v1619_v5 = vld [vmem:[%s1601_s4 + $0x20] sm:$0xff]   ;;  %v250_v10 = vunpack.c.l.bf16 %v1616_v4  ;;  %v323_v13 = vunpack.c.h.bf16 %v1616_v4  ;;  %v1273_v50 = vld [vmem:[#allocation6 + $0x28] sm:$0xff]   ;;  %vm840_vm4 = vcmask 1044484   ;;  %vm842_vm5 = vcmask 1045509   ;;  %s1091_s23 = sshll.u32 %s1597_s8, 3  ;;  %s1158_s5 = sshll.u32 %s1410_s15, 7 }
  0x70   : > { %1177 = vmatprep.subr.bf16.mxu0 %v1426_v0  ;;  %v1622_v6 = vld [vmem:[%s1601_s4 + $0x40] sm:$0xff]   ;;  %v251_v11 = vunpack.c.l.bf16 %v1619_v5  ;;  %v324_v20 = vunpack.c.h.bf16 %v1619_v5  ;;  %vm844_vm6 = vcmask 1046534   ;;  %vm846_vm7 = vcmask 1047559   ;;  %s228_s11 = scalar_lea.vmem [#allocation8], %s1091_s23  ;;  %s1966_s22 = scalar_lea.hbm %s2018_s3, %s1158_s5 }
  0x71   : > { %v1625_v7 = vld [vmem:[%s1601_s4 + $0x60] sm:$0xff]   ;;  %v252_v12 = vunpack.c.l.bf16 %v1622_v6  ;;  %v258_v23 = vrot.slane %v250_v10, 4  ;;  %s982_s24 = sshll.u32 %s228_s11, 4  ;;  %s969_s19 = scalar_lea.sflag [#allocation5], %s1597_s8  ;;  %s1968_s24 = int_to_ptr.vmem [resolvable:$true] %s982_s24 }
  0x72   : > { %v1628_v8 = vld [vmem:[%s1601_s4 + $0x80] sm:$0xff]   ;;  %v253_v17 = vunpack.c.l.bf16 %v1625_v7  ;;  %v264_v24 = vrot.slane %v251_v11, 4  ;;  %s1332_s15 = scalar_lea.vmem %s1968_s24, 128  ;;  %p2035_p12 = scmp.ne.s32.totalorder %s2027_s26, 0 }
  0x73   : > { %1178 = vmatpush3.bf16.msra.mxu0 %v1269_v2  ;;  %v1631_v9 = vld [vmem:[%s1601_s4 + $0xa0] sm:$0xff]   ;;  %v254_v18 = vunpack.c.l.bf16 %v1628_v8  ;;  %v270_v25 = vrot.slane %v252_v12, 4  ;;  %v259_v29 = vadd.f32 %v258_v23, %v250_v10  ;;  %v1274_v10 = vld [vmem:[#allocation6 + $0x30] sm:$0xff]   ;;  %v327_v23 = vunpack.c.h.bf16 %v1628_v8  ;;  %p1333_p10 = scmp.ne.s32.totalorder %s1968_s24, %s1332_s15  ;;  %s1428_s21 = smov [#allocation8]  }
  0x74   : > { %1179 = vmatprep.subr.bf16.mxu0 %v1426_v0  ;;  %v1638_v15 = vld [vmem:[%s1601_s4 + $0xc0] sm:$0xff]   ;;  %v255_v19 = vunpack.c.l.bf16 %v1631_v9  ;;  %v276_v26 = vrot.slane %v253_v17, 4  ;;  %v265_v30 = vadd.f32 %v264_v24, %v251_v11  ;;  %v328_v24 = vunpack.c.h.bf16 %v1631_v9  ;;  %s1336_s6 = sshll.u32 %s1428_s21, 4  ;;  %s1337_s6 = int_to_ptr.vmem [resolvable:$false] %s1336_s6 }
  0x75   : > { %v1641_v16 = vld [vmem:[%s1601_s4 + $0xe0] sm:$0xff]   ;;  %v256_v21 = vunpack.c.l.bf16 %v1638_v15  ;;  %v282_v27 = vrot.slane %v254_v18, 4  ;;  %v271_v34 = vadd.f32 %v270_v25, %v252_v12  ;;  %v260_v38 = vrot.slane %v259_v29, 2  ;;  %p1334_p13 = pnand %p1333_p10, %p2035_p12  ;;  %s1338_s7 = scalar_lea.vmem %s1337_s6, 256 }
  0x76   : > { %v257_v22 = vunpack.c.l.bf16 %v1641_v16  ;;  %v288_v28 = vrot.slane %v255_v19, 4  ;;  %v1272_v33 = vld [vmem:[#allocation6 + $0x20] sm:$0xff]   ;;  %v277_v35 = vadd.f32 %v276_v26, %v253_v17  ;;  %v266_v39 = vrot.slane %v265_v30, 2  ;;  %p1339_p11 = scmp.lt.s32.totalorder %s1968_s24, %s1337_s6  ;;  %p1340_p4 = scmp.lt.s32.totalorder %s1338_s7, %s1332_s15 }
  0x77   : > { %1180 = vmatpush3.bf16.msra.mxu0 %v1270_v3  ;;  %v294_v31 = vrot.slane %v256_v21, 4  ;;  %v283_v36 = vadd.f32 %v282_v27, %v254_v18  ;;  %v272_v42 = vrot.slane %v271_v34, 2  ;;  %v261_v46 = vadd.f32 %v260_v38, %v259_v29  ;;  %p1335_p1 = pneg %p1334_p13 }
  0x78   : > { %1181 = vmatprep.subr.bf16.mxu0 %v1426_v0  ;;  %v300_v32 = vrot.slane %v257_v22, 4  ;;  %v289_v37 = vadd.f32 %v288_v28, %v255_v19  ;;  %v278_v43 = vrot.slane %v277_v35, 2  ;;  %v267_v47 = vadd.f32 %v266_v39, %v265_v30  ;;  %p1341_p8 = por %p1340_p4, %p1339_p11 }
  0x79   : > { %v295_v40 = vadd.f32 %v294_v31, %v256_v21  ;;  %v284_v44 = vrot.slane %v283_v36, 2  ;;  %v273_v51 = vadd.f32 %v272_v42, %v271_v34  ;;  %v262_v55 = vrot.slane %v261_v46, 1 }
  0x7a   : > { %v301_v41 = vadd.f32 %v300_v32, %v257_v22  ;;  %v290_v45 = vrot.slane %v289_v37, 2  ;;  %v279_v52 = vadd.f32 %v278_v43, %v277_v35  ;;  %v268_v56 = vrot.slane %v267_v47, 1  ;;  %p1342_p9 = pnand %p1341_p8, %p1335_p1 }
  0x7b   : > { %1182 = vmatpush3.bf16.msra.mxu0 %v1271_v14  ;;  %v296_v48 = vrot.slane %v295_v40, 2  ;;  %v285_v53 = vadd.f32 %v284_v44, %v283_v36  ;;  %v274_v59 = vrot.slane %v273_v51, 1  ;;  %v1652_v63 = vadd.f32 %v262_v55, %v261_v46 }
  0x7c   : > { %1183 = vmatprep.subr.bf16.mxu0 %v1426_v0  ;;  %v302_v49 = vrot.slane %v301_v41, 2  ;;  %v291_v54 = vadd.f32 %v290_v45, %v289_v37  ;;  %v280_v60 = vrot.slane %v279_v52, 1  ;;  %v1654_v1 = vadd.f32 %v268_v56, %v267_v47 }
  0x7d   : > { %v297_v57 = vadd.f32 %v296_v48, %v295_v40  ;;  %v286_v61 = vrot.slane %v285_v53, 1  ;;  %v1656_v11 = vadd.f32 %v274_v59, %v273_v51  ;;  %v325_v21 = vunpack.c.h.bf16 %v1622_v6  ;;  %v1275_v6 = vld [vmem:[#allocation6 + $0x38] sm:$0xff]  }
  0x7e   : > { %v303_v58 = vadd.f32 %v302_v49, %v301_v41  ;;  %v292_v62 = vrot.slane %v291_v54, 1  ;;  %v1658_v12 = vadd.f32 %v280_v60, %v279_v52  ;;  %v326_v22 = vunpack.c.h.bf16 %v1625_v7 }
  0x7f   : > { %1184 = vmatpush3.bf16.msra.mxu0 %v1272_v33  ;;  %v298_v2 = vrot.slane %v297_v57, 1  ;;  %v1660_v14 = vadd.f32 %v286_v61, %v285_v53  ;;  %v329_v25 = vunpack.c.h.bf16 %v1638_v15  ;;  %v330_v26 = vunpack.c.h.bf16 %v1641_v16  ;;  %v1685_v61 = vld [vmem:[%s1601_s4 + $0x8] sm:$0xff]  }
  0x80   : > { %1185 = vmatprep.subr.bf16.mxu0 %v1426_v0  ;;  %v304_v3 = vrot.slane %v303_v58, 1  ;;  %v1662_v17 = vadd.f32 %v292_v62, %v291_v54  ;;  %v331_v27 = vrot.slane %v323_v13, 4  ;;  %v337_v28 = vrot.slane %v324_v20, 4  ;;  %v1688_v62 = vld [vmem:[%s1601_s4 + $0x28] sm:$0xff]  }
  0x81   : > { %v1665_v18 = vadd.f32 %v298_v2, %v297_v57  ;;  %v343_v29 = vrot.slane %v325_v21, 4  ;;  %v349_v30 = vrot.slane %v326_v22, 4  ;;  %v355_v31 = vrot.slane %v327_v23, 4 }
  0x82   : > { %v1667_v19 = vadd.f32 %v304_v3, %v303_v58  ;;  %v361_v7 = vrot.slane %v328_v24, 4  ;;  %v367_v32 = vrot.slane %v329_v25, 4  ;;  %v373_v8 = vrot.slane %v330_v26, 4 }
  0x83   : > { %1186 = vmatpush3.bf16.msra.mxu0 %v1273_v50  ;;  %v332_v9 = vadd.f32 %v331_v27, %v323_v13  ;;  %v338_v15 = vadd.f32 %v337_v28, %v324_v20  ;;  %v344_v16 = vadd.f32 %v343_v29, %v325_v21  ;;  %v350_v33 = vadd.f32 %v349_v30, %v326_v22  ;;  %v1691_v22 = vld [vmem:[%s1601_s4 + $0x48] sm:$0xff]  }
  0x84   : > { %1187 = vmatprep.subr.bf16.mxu0 %v1426_v0  ;;  %v356_v34 = vadd.f32 %v355_v31, %v327_v23  ;;  %v362_v35 = vadd.f32 %v361_v7, %v328_v24  ;;  %v368_v36 = vadd.f32 %v367_v32, %v329_v25  ;;  %v374_v37 = vadd.f32 %v373_v8, %v330_v26  ;;  %v1694_v23 = vld [vmem:[%s1601_s4 + $0x68] sm:$0xff]  }
  0x85   : > { %v333_v38 = vrot.slane %v332_v9, 2  ;;  %v339_v39 = vrot.slane %v338_v15, 2  ;;  %v345_v40 = vrot.slane %v344_v16, 2  ;;  %v351_v41 = vrot.slane %v350_v33, 2  ;;  %v1697_v24 = vld [vmem:[%s1601_s4 + $0x88] sm:$0xff]  }
  0x86   : > { %v357_v42 = vrot.slane %v356_v34, 2  ;;  %v363_v43 = vrot.slane %v362_v35, 2  ;;  %v375_v44 = vrot.slane %v374_v37, 2  ;;  %v1712_v29 = vld [vmem:[%s1601_s4 + $0xa8] sm:$0xff]   ;;  %v397_v7 = vunpack.c.l.bf16 %v1688_v62 }
  0x87   : > { %1188 = vmatpush3.bf16.msra.mxu0 %v1274_v10  ;;  %v334_v4 = vadd.f32 %v333_v38, %v332_v9  ;;  %v340_v13 = vadd.f32 %v339_v39, %v338_v15  ;;  %v346_v45 = vadd.f32 %v345_v40, %v344_v16  ;;  %v352_v5 = vadd.f32 %v351_v41, %v350_v33  ;;  %v1715_v30 = vld [vmem:[%s1601_s4 + $0xc8] sm:$0xff]  }
  0x88   : > { %1189 = vmatprep.subr.bf16.mxu0 %v1426_v0  ;;  %v369_v0 = vrot.slane %v368_v36, 2  ;;  %v358_v20 = vadd.f32 %v357_v42, %v356_v34  ;;  %v364_v46 = vadd.f32 %v363_v43, %v362_v35  ;;  %v376_v48 = vadd.f32 %v375_v44, %v374_v37 }
  0x89   : > { %v335_v49 = vrot.slane %v334_v4, 1  ;;  %v341_v50 = vrot.slane %v340_v13, 1  ;;  %v347_v51 = vrot.slane %v346_v45, 1  ;;  %v353_v52 = vrot.slane %v352_v5, 1 }
  0x8a   : > { %v370_v47 = vadd.f32 %v369_v0, %v368_v36  ;;  %v359_v53 = vrot.slane %v358_v20, 1  ;;  %v365_v54 = vrot.slane %v364_v46, 1  ;;  %v377_v56 = vrot.slane %v376_v48, 1 }
  0x8b   : > { %1190 = vmatpush3.bf16.msra.mxu0 %v1275_v6  ;;  %v336_v57 = vadd.f32 %v335_v49, %v334_v4  ;;  %v342_v58 = vadd.f32 %v341_v50, %v340_v13  ;;  %v348_v59 = vadd.f32 %v347_v51, %v346_v45  ;;  %v354_v60 = vadd.f32 %v353_v52, %v352_v5  ;;  %v1718_v6 = vld [vmem:[%s1601_s4 + $0xe8] sm:$0xff]  }
  0x8c   : > { %v371_v55 = vrot.slane %v370_v47, 1  ;;  %v360_v2 = vadd.f32 %v359_v53, %v358_v20  ;;  %v366_v3 = vadd.f32 %v365_v54, %v364_v46  ;;  %v378_v21 = vadd.f32 %v377_v56, %v376_v48 }
  0x8d   : > { %v1700_v25 = vadd.f32 %v336_v57, %v1652_v63  ;;  %v1703_v26 = vadd.f32 %v342_v58, %v1654_v1  ;;  %v1706_v27 = vadd.f32 %v348_v59, %v1656_v11  ;;  %v1709_v28 = vadd.f32 %v354_v60, %v1658_v12 }
  0x8e   : > { %v372_v10 = vadd.f32 %v371_v55, %v370_v47  ;;  %v1721_v31 = vadd.f32 %v360_v2, %v1660_v14  ;;  %v1724_v63 = vadd.f32 %v366_v3, %v1662_v17  ;;  %v1730_v11 = vadd.f32 %v378_v21, %v1667_v19 }
  0x8f   : > { %v396_v12 = vunpack.c.l.bf16 %v1685_v61  ;;  %v398_v32 = vunpack.c.l.bf16 %v1691_v22  ;;  %v399_v8 = vunpack.c.l.bf16 %v1694_v23  ;;  %v400_v14 = vunpack.c.l.bf16 %v1697_v24 }
  0x90   : > { %v1727_v1 = vadd.f32 %v372_v10, %v1665_v18  ;;  %v401_v9 = vunpack.c.l.bf16 %v1712_v29  ;;  %v402_v17 = vunpack.c.l.bf16 %v1715_v30  ;;  %v403_v18 = vunpack.c.l.bf16 %v1718_v6 }
  0x91   : > { %v404_v15 = vrot.slane %v396_v12, 4  ;;  %v410_v16 = vrot.slane %v397_v7, 4  ;;  %v416_v19 = vrot.slane %v398_v32, 4  ;;  %v422_v33 = vrot.slane %v399_v8, 4 }
  0x92   : > { %v428_v34 = vrot.slane %v400_v14, 4  ;;  %v434_v35 = vrot.slane %v401_v9, 4  ;;  %v440_v36 = vrot.slane %v402_v17, 4  ;;  %v446_v37 = vrot.slane %v403_v18, 4 }
  0x93   : > { %v405_v38 = vadd.f32 %v404_v15, %v396_v12  ;;  %v411_v39 = vadd.f32 %v410_v16, %v397_v7  ;;  %v417_v40 = vadd.f32 %v416_v19, %v398_v32  ;;  %v423_v41 = vadd.f32 %v422_v33, %v399_v8 }
  0x94   : > { %v429_v42 = vadd.f32 %v428_v34, %v400_v14  ;;  %v435_v43 = vadd.f32 %v434_v35, %v401_v9  ;;  %v441_v0 = vadd.f32 %v440_v36, %v402_v17  ;;  %v447_v44 = vadd.f32 %v446_v37, %v403_v18 }
  0x95   : > { %v406_v4 = vrot.slane %v405_v38, 2  ;;  %v412_v13 = vrot.slane %v411_v39, 2  ;;  %v418_v45 = vrot.slane %v417_v40, 2  ;;  %v424_v5 = vrot.slane %v423_v41, 2 }
  0x96   : > { %v430_v20 = vrot.slane %v429_v42, 2  ;;  %v436_v46 = vrot.slane %v435_v43, 2  ;;  %v442_v47 = vrot.slane %v441_v0, 2  ;;  %v448_v48 = vrot.slane %v447_v44, 2 }
  0x97   : > { %v407_v49 = vadd.f32 %v406_v4, %v405_v38  ;;  %v413_v50 = vadd.f32 %v412_v13, %v411_v39  ;;  %v419_v51 = vadd.f32 %v418_v45, %v417_v40  ;;  %v425_v52 = vadd.f32 %v424_v5, %v423_v41 }
  0x98   : > { %v431_v53 = vadd.f32 %v430_v20, %v429_v42  ;;  %v437_v54 = vadd.f32 %v436_v46, %v435_v43  ;;  %v443_v55 = vadd.f32 %v442_v47, %v441_v0  ;;  %v449_v56 = vadd.f32 %v448_v48, %v447_v44 }
  0x99   : > { %v408_v57 = vrot.slane %v407_v49, 1  ;;  %v414_v58 = vrot.slane %v413_v50, 1  ;;  %v420_v59 = vrot.slane %v419_v51, 1  ;;  %v426_v60 = vrot.slane %v425_v52, 1 }
  0x9a   : > { %v432_v2 = vrot.slane %v431_v53, 1  ;;  %v438_v3 = vrot.slane %v437_v54, 1  ;;  %v444_v10 = vrot.slane %v443_v55, 1  ;;  %v450_v21 = vrot.slane %v449_v56, 1 }
  0x9b   : > { %v409_v12 = vadd.f32 %v408_v57, %v407_v49  ;;  %v415_v7 = vadd.f32 %v414_v58, %v413_v50  ;;  %v421_v32 = vadd.f32 %v420_v59, %v419_v51  ;;  %v427_v8 = vadd.f32 %v426_v60, %v425_v52 }
  0x9c   : > { %v433_v14 = vadd.f32 %v432_v2, %v431_v53  ;;  %v439_v9 = vadd.f32 %v438_v3, %v437_v54  ;;  %v445_v17 = vadd.f32 %v444_v10, %v443_v55  ;;  %v451_v18 = vadd.f32 %v450_v21, %v449_v56 }
  0x9d   : > { %v1741_v15 = vadd.f32 %v409_v12, %v1700_v25  ;;  %v1744_v16 = vadd.f32 %v415_v7, %v1703_v26  ;;  %v1747_v19 = vadd.f32 %v421_v32, %v1706_v27  ;;  %v1750_v33 = vadd.f32 %v427_v8, %v1709_v28 }
  0x9e   : > { %v1753_v34 = vadd.f32 %v433_v14, %v1721_v31  ;;  %v1756_v35 = vadd.f32 %v439_v9, %v1724_v63  ;;  %v1759_v36 = vadd.f32 %v445_v17, %v1727_v1  ;;  %v1762_v25 = vadd.f32 %v451_v18, %v1730_v11  ;;  %v1773_v14 = vld [vmem:[%s1601_s4 + $0x10] sm:$0xff]  }
  0x9f   : > { %v469_v26 = vunpack.c.h.bf16 %v1685_v61  ;;  %v470_v27 = vunpack.c.h.bf16 %v1688_v62  ;;  %v471_v37 = vunpack.c.h.bf16 %v1691_v22  ;;  %v472_v28 = vunpack.c.h.bf16 %v1694_v23  ;;  %v1776_v9 = vld [vmem:[%s1601_s4 + $0x30] sm:$0xff]  }
  0xa0   : > { %v473_v31 = vunpack.c.h.bf16 %v1697_v24  ;;  %v474_v38 = vunpack.c.h.bf16 %v1712_v29  ;;  %v475_v63 = vunpack.c.h.bf16 %v1715_v30  ;;  %v476_v1 = vunpack.c.h.bf16 %v1718_v6 }
  0xa1   : > { %v477_v39 = vrot.slane %v469_v26, 4  ;;  %v483_v40 = vrot.slane %v470_v27, 4  ;;  %v489_v11 = vrot.slane %v471_v37, 4  ;;  %v495_v41 = vrot.slane %v472_v28, 4 }
  0xa2   : > { %v501_v42 = vrot.slane %v473_v31, 4  ;;  %v507_v61 = vrot.slane %v474_v38, 4  ;;  %v513_v43 = vrot.slane %v475_v63, 4  ;;  %v519_v62 = vrot.slane %v476_v1, 4 }
  0xa3   : > { %v478_v0 = vadd.f32 %v477_v39, %v469_v26  ;;  %v484_v22 = vadd.f32 %v483_v40, %v470_v27  ;;  %v490_v44 = vadd.f32 %v489_v11, %v471_v37  ;;  %v496_v23 = vadd.f32 %v495_v41, %v472_v28  ;;  %v1779_v37 = vld [vmem:[%s1601_s4 + $0x50] sm:$0xff]  }
  0xa4   : > { %v502_v4 = vadd.f32 %v501_v42, %v473_v31  ;;  %v508_v24 = vadd.f32 %v507_v61, %v474_v38  ;;  %v514_v13 = vadd.f32 %v513_v43, %v475_v63  ;;  %v520_v29 = vadd.f32 %v519_v62, %v476_v1  ;;  %v1782_v28 = vld [vmem:[%s1601_s4 + $0x70] sm:$0xff]  }
  0xa5   : > { %v479_v45 = vrot.slane %v478_v0, 2  ;;  %v485_v30 = vrot.slane %v484_v22, 2  ;;  %v491_v5 = vrot.slane %v490_v44, 2  ;;  %v497_v6 = vrot.slane %v496_v23, 2  ;;  %v1785_v31 = vld [vmem:[%s1601_s4 + $0x90] sm:$0xff]  }
  0xa6   : > { %v503_v20 = vrot.slane %v502_v4, 2  ;;  %v509_v46 = vrot.slane %v508_v24, 2  ;;  %v515_v47 = vrot.slane %v514_v13, 2  ;;  %v521_v48 = vrot.slane %v520_v29, 2  ;;  %v1800_v40 = vld [vmem:[%s1601_s4 + $0xb0] sm:$0xff]  }
  0xa7   : > { %v480_v49 = vadd.f32 %v479_v45, %v478_v0  ;;  %v486_v50 = vadd.f32 %v485_v30, %v484_v22  ;;  %v492_v51 = vadd.f32 %v491_v5, %v490_v44  ;;  %v498_v52 = vadd.f32 %v497_v6, %v496_v23  ;;  %v1803_v11 = vld [vmem:[%s1601_s4 + $0xd0] sm:$0xff]  }
  0xa8   : > { %v504_v53 = vadd.f32 %v503_v20, %v502_v4  ;;  %v510_v54 = vadd.f32 %v509_v46, %v508_v24  ;;  %v516_v55 = vadd.f32 %v515_v47, %v514_v13  ;;  %v522_v56 = vadd.f32 %v521_v48, %v520_v29  ;;  %v1806_v41 = vld [vmem:[%s1601_s4 + $0xf0] sm:$0xff]  }
  0xa9   : > { %v481_v57 = vrot.slane %v480_v49, 1  ;;  %v487_v58 = vrot.slane %v486_v50, 1  ;;  %v493_v59 = vrot.slane %v492_v51, 1  ;;  %v499_v60 = vrot.slane %v498_v52, 1 }
  0xaa   : > { %v505_v2 = vrot.slane %v504_v53, 1  ;;  %v511_v3 = vrot.slane %v510_v54, 1  ;;  %v517_v10 = vrot.slane %v516_v55, 1  ;;  %v523_v21 = vrot.slane %v522_v56, 1 }
  0xab   : > { %v482_v12 = vadd.f32 %v481_v57, %v480_v49  ;;  %v488_v7 = vadd.f32 %v487_v58, %v486_v50  ;;  %v494_v32 = vadd.f32 %v493_v59, %v492_v51  ;;  %v500_v8 = vadd.f32 %v499_v60, %v498_v52 }
  0xac   : > { %v506_v17 = vadd.f32 %v505_v2, %v504_v53  ;;  %v512_v18 = vadd.f32 %v511_v3, %v510_v54  ;;  %v518_v26 = vadd.f32 %v517_v10, %v516_v55  ;;  %v524_v27 = vadd.f32 %v523_v21, %v522_v56 }
  0xad   : > { %v1788_v38 = vadd.f32 %v482_v12, %v1741_v15  ;;  %v1791_v63 = vadd.f32 %v488_v7, %v1744_v16  ;;  %v1794_v1 = vadd.f32 %v494_v32, %v1747_v19  ;;  %v1797_v39 = vadd.f32 %v500_v8, %v1750_v33 }
  0xae   : > { %v1809_v42 = vadd.f32 %v506_v17, %v1753_v34  ;;  %v1812_v15 = vadd.f32 %v512_v18, %v1756_v35  ;;  %v1815_v16 = vadd.f32 %v518_v26, %v1759_v36  ;;  %v1818_v19 = vadd.f32 %v524_v27, %v1762_v25 }
  0xaf   : > { %v542_v33 = vunpack.c.l.bf16 %v1773_v14  ;;  %v543_v61 = vunpack.c.l.bf16 %v1776_v9  ;;  %v544_v43 = vunpack.c.l.bf16 %v1779_v37  ;;  %v545_v62 = vunpack.c.l.bf16 %v1782_v28 }
  0xb0   : > { %v546_v34 = vunpack.c.l.bf16 %v1785_v31  ;;  %v547_v0 = vunpack.c.l.bf16 %v1800_v40  ;;  %v548_v35 = vunpack.c.l.bf16 %v1803_v11  ;;  %v549_v36 = vunpack.c.l.bf16 %v1806_v41 }
  0xb1   : > { %v550_v22 = vrot.slane %v542_v33, 4  ;;  %v556_v44 = vrot.slane %v543_v61, 4  ;;  %v562_v25 = vrot.slane %v544_v43, 4  ;;  %v568_v23 = vrot.slane %v545_v62, 4 }
  0xb2   : > { %v574_v4 = vrot.slane %v546_v34, 4  ;;  %v580_v24 = vrot.slane %v547_v0, 4  ;;  %v586_v13 = vrot.slane %v548_v35, 4  ;;  %v592_v29 = vrot.slane %v549_v36, 4 }
  0xb3   : > { %v551_v45 = vadd.f32 %v550_v22, %v542_v33  ;;  %v557_v30 = vadd.f32 %v556_v44, %v543_v61  ;;  %v563_v5 = vadd.f32 %v562_v25, %v544_v43  ;;  %v569_v6 = vadd.f32 %v568_v23, %v545_v62 }
  0xb4   : > { %v575_v20 = vadd.f32 %v574_v4, %v546_v34  ;;  %v581_v46 = vadd.f32 %v580_v24, %v547_v0  ;;  %v587_v47 = vadd.f32 %v586_v13, %v548_v35  ;;  %v593_v48 = vadd.f32 %v592_v29, %v549_v36 }
  0xb5   : > { %v552_v49 = vrot.slane %v551_v45, 2  ;;  %v558_v50 = vrot.slane %v557_v30, 2  ;;  %v564_v51 = vrot.slane %v563_v5, 2  ;;  %v570_v52 = vrot.slane %v569_v6, 2 }
  0xb6   : > { %v576_v53 = vrot.slane %v575_v20, 2  ;;  %v582_v54 = vrot.slane %v581_v46, 2  ;;  %v588_v55 = vrot.slane %v587_v47, 2  ;;  %v594_v56 = vrot.slane %v593_v48, 2 }
  0xb7   : > { %v553_v57 = vadd.f32 %v552_v49, %v551_v45  ;;  %v559_v58 = vadd.f32 %v558_v50, %v557_v30  ;;  %v565_v59 = vadd.f32 %v564_v51, %v563_v5  ;;  %v571_v60 = vadd.f32 %v570_v52, %v569_v6 }
  0xb8   : > { %v577_v2 = vadd.f32 %v576_v53, %v575_v20  ;;  %v583_v3 = vadd.f32 %v582_v54, %v581_v46  ;;  %v589_v10 = vadd.f32 %v588_v55, %v587_v47  ;;  %v595_v21 = vadd.f32 %v594_v56, %v593_v48 }
  0xb9   : > { %v554_v12 = vrot.slane %v553_v57, 1  ;;  %v560_v7 = vrot.slane %v559_v58, 1  ;;  %v566_v32 = vrot.slane %v565_v59, 1  ;;  %v572_v8 = vrot.slane %v571_v60, 1 }
  0xba   : > { %v578_v17 = vrot.slane %v577_v2, 1  ;;  %v584_v18 = vrot.slane %v583_v3, 1  ;;  %v590_v26 = vrot.slane %v589_v10, 1  ;;  %v596_v27 = vrot.slane %v595_v21, 1 }
  0xbb   : > { %v555_v33 = vadd.f32 %v554_v12, %v553_v57  ;;  %v561_v61 = vadd.f32 %v560_v7, %v559_v58  ;;  %v567_v43 = vadd.f32 %v566_v32, %v565_v59  ;;  %v573_v62 = vadd.f32 %v572_v8, %v571_v60 }
  0xbc   : > { %v579_v34 = vadd.f32 %v578_v17, %v577_v2  ;;  %v585_v0 = vadd.f32 %v584_v18, %v583_v3  ;;  %v591_v35 = vadd.f32 %v590_v26, %v589_v10  ;;  %v597_v36 = vadd.f32 %v596_v27, %v595_v21 }
  0xbd   : > { %v1829_v22 = vadd.f32 %v555_v33, %v1788_v38  ;;  %v1832_v44 = vadd.f32 %v561_v61, %v1791_v63  ;;  %v1835_v25 = vadd.f32 %v567_v43, %v1794_v1  ;;  %v1838_v23 = vadd.f32 %v573_v62, %v1797_v39 }
  0xbe   : > { %v1841_v4 = vadd.f32 %v579_v34, %v1809_v42  ;;  %v1844_v24 = vadd.f32 %v585_v0, %v1812_v15  ;;  %v1847_v13 = vadd.f32 %v591_v35, %v1815_v16  ;;  %v1850_v38 = vadd.f32 %v597_v36, %v1818_v19  ;;  %v1861_v34 = vld [vmem:[%s1601_s4 + $0x18] sm:$0xff]  }
  0xbf   : > { %v615_v63 = vunpack.c.h.bf16 %v1773_v14  ;;  %v616_v1 = vunpack.c.h.bf16 %v1776_v9  ;;  %v617_v29 = vunpack.c.h.bf16 %v1779_v37  ;;  %v618_v39 = vunpack.c.h.bf16 %v1782_v28  ;;  %v1864_v0 = vld [vmem:[%s1601_s4 + $0x38] sm:$0xff]  }
  0xc0   : > { %v619_v42 = vunpack.c.h.bf16 %v1785_v31  ;;  %v620_v45 = vunpack.c.h.bf16 %v1800_v40  ;;  %v621_v15 = vunpack.c.h.bf16 %v1803_v11  ;;  %v622_v16 = vunpack.c.h.bf16 %v1806_v41 }
  0xc1   : > { %v623_v30 = vrot.slane %v615_v63, 4  ;;  %v629_v5 = vrot.slane %v616_v1, 4  ;;  %v635_v19 = vrot.slane %v617_v29, 4  ;;  %v641_v6 = vrot.slane %v618_v39, 4 }
  0xc2   : > { %v647_v20 = vrot.slane %v619_v42, 4  ;;  %v653_v14 = vrot.slane %v620_v45, 4  ;;  %v659_v46 = vrot.slane %v621_v15, 4  ;;  %v665_v9 = vrot.slane %v622_v16, 4 }
  0xc3   : > { %v624_v47 = vadd.f32 %v623_v30, %v615_v63  ;;  %v630_v37 = vadd.f32 %v629_v5, %v616_v1  ;;  %v636_v48 = vadd.f32 %v635_v19, %v617_v29  ;;  %v642_v28 = vadd.f32 %v641_v6, %v618_v39  ;;  %v1867_v29 = vld [vmem:[%s1601_s4 + $0x58] sm:$0xff]  }
  0xc4   : > { %v648_v49 = vadd.f32 %v647_v20, %v619_v42  ;;  %v654_v31 = vadd.f32 %v653_v14, %v620_v45  ;;  %v660_v50 = vadd.f32 %v659_v46, %v621_v15  ;;  %v666_v40 = vadd.f32 %v665_v9, %v622_v16  ;;  %v1870_v39 = vld [vmem:[%s1601_s4 + $0x78] sm:$0xff]  }
  0xc5   : > { %v625_v51 = vrot.slane %v624_v47, 2  ;;  %v631_v11 = vrot.slane %v630_v37, 2  ;;  %v637_v52 = vrot.slane %v636_v48, 2  ;;  %v643_v41 = vrot.slane %v642_v28, 2  ;;  %v1873_v42 = vld [vmem:[%s1601_s4 + $0x98] sm:$0xff]  }
  0xc6   : > { %v649_v53 = vrot.slane %v648_v49, 2  ;;  %v655_v54 = vrot.slane %v654_v31, 2  ;;  %v661_v55 = vrot.slane %v660_v50, 2  ;;  %v667_v56 = vrot.slane %v666_v40, 2  ;;  %v1888_v5 = vld [vmem:[%s1601_s4 + $0xb8] sm:$0xff]  }
  0xc7   : > { %v626_v57 = vadd.f32 %v625_v51, %v624_v47  ;;  %v632_v58 = vadd.f32 %v631_v11, %v630_v37  ;;  %v638_v59 = vadd.f32 %v637_v52, %v636_v48  ;;  %v644_v60 = vadd.f32 %v643_v41, %v642_v28  ;;  %v1891_v19 = vld [vmem:[%s1601_s4 + $0xd8] sm:$0xff]  }
  0xc8   : > { %v650_v2 = vadd.f32 %v649_v53, %v648_v49  ;;  %v656_v3 = vadd.f32 %v655_v54, %v654_v31  ;;  %v662_v10 = vadd.f32 %v661_v55, %v660_v50  ;;  %v668_v21 = vadd.f32 %v667_v56, %v666_v40  ;;  %v1894_v6 = vld [vmem:[%s1601_s4 + $0xf8] sm:$0xff]  }
  0xc9   : > { %v627_v12 = vrot.slane %v626_v57, 1  ;;  %v633_v7 = vrot.slane %v632_v58, 1  ;;  %v639_v32 = vrot.slane %v638_v59, 1  ;;  %v645_v8 = vrot.slane %v644_v60, 1 }
  0xca   : > { %v651_v17 = vrot.slane %v650_v2, 1  ;;  %v657_v18 = vrot.slane %v656_v3, 1  ;;  %v663_v26 = vrot.slane %v662_v10, 1  ;;  %v669_v27 = vrot.slane %v668_v21, 1 }
  0xcb   : > { %v628_v33 = vadd.f32 %v627_v12, %v626_v57  ;;  %v634_v61 = vadd.f32 %v633_v7, %v632_v58  ;;  %v640_v43 = vadd.f32 %v639_v32, %v638_v59  ;;  %v646_v62 = vadd.f32 %v645_v8, %v644_v60 }
  0xcc   : > { %v652_v35 = vadd.f32 %v651_v17, %v650_v2  ;;  %v658_v36 = vadd.f32 %v657_v18, %v656_v3  ;;  %v664_v63 = vadd.f32 %v663_v26, %v662_v10  ;;  %v670_v1 = vadd.f32 %v669_v27, %v668_v21 }
  0xcd   : > { %v1876_v45 = vadd.f32 %v628_v33, %v1829_v22  ;;  %v1879_v15 = vadd.f32 %v634_v61, %v1832_v44  ;;  %v1882_v16 = vadd.f32 %v640_v43, %v1835_v25  ;;  %v1885_v30 = vadd.f32 %v646_v62, %v1838_v23 }
  0xce   : > { %v1897_v20 = vadd.f32 %v652_v35, %v1841_v4  ;;  %v1900_v22 = vadd.f32 %v658_v36, %v1844_v24  ;;  %v1903_v44 = vadd.f32 %v664_v63, %v1847_v13  ;;  %v1906_v25 = vadd.f32 %v670_v1, %v1850_v38 }
  0xcf   : > { %v688_v23 = vunpack.c.l.bf16 %v1861_v34  ;;  %v689_v14 = vunpack.c.l.bf16 %v1864_v0  ;;  %v690_v46 = vunpack.c.l.bf16 %v1867_v29  ;;  %v691_v9 = vunpack.c.l.bf16 %v1870_v39 }
  0xd0   : > { %v692_v4 = vunpack.c.l.bf16 %v1873_v42  ;;  %v693_v47 = vunpack.c.l.bf16 %v1888_v5  ;;  %v694_v24 = vunpack.c.l.bf16 %v1891_v19  ;;  %v695_v13 = vunpack.c.l.bf16 %v1894_v6 }
  0xd1   : > { %v696_v37 = vrot.slane %v688_v23, 4  ;;  %v702_v48 = vrot.slane %v689_v14, 4  ;;  %v708_v38 = vrot.slane %v690_v46, 4  ;;  %v714_v28 = vrot.slane %v691_v9, 4 }
  0xd2   : > { %v720_v49 = vrot.slane %v692_v4, 4  ;;  %v726_v31 = vrot.slane %v693_v47, 4  ;;  %v732_v50 = vrot.slane %v694_v24, 4  ;;  %v738_v40 = vrot.slane %v695_v13, 4 }
  0xd3   : > { %v697_v51 = vadd.f32 %v696_v37, %v688_v23  ;;  %v703_v11 = vadd.f32 %v702_v48, %v689_v14  ;;  %v709_v52 = vadd.f32 %v708_v38, %v690_v46  ;;  %v715_v41 = vadd.f32 %v714_v28, %v691_v9 }
  0xd4   : > { %v721_v53 = vadd.f32 %v720_v49, %v692_v4  ;;  %v727_v54 = vadd.f32 %v726_v31, %v693_v47  ;;  %v733_v55 = vadd.f32 %v732_v50, %v694_v24  ;;  %v739_v56 = vadd.f32 %v738_v40, %v695_v13 }
  0xd5   : > { %v698_v57 = vrot.slane %v697_v51, 2  ;;  %v704_v58 = vrot.slane %v703_v11, 2  ;;  %v710_v59 = vrot.slane %v709_v52, 2  ;;  %v716_v60 = vrot.slane %v715_v41, 2 }
  0xd6   : > { %v722_v2 = vrot.slane %v721_v53, 2  ;;  %v728_v3 = vrot.slane %v727_v54, 2  ;;  %v734_v10 = vrot.slane %v733_v55, 2  ;;  %v740_v21 = vrot.slane %v739_v56, 2 }
  0xd7   : > { %v699_v12 = vadd.f32 %v698_v57, %v697_v51  ;;  %v705_v7 = vadd.f32 %v704_v58, %v703_v11  ;;  %v711_v32 = vadd.f32 %v710_v59, %v709_v52  ;;  %v717_v8 = vadd.f32 %v716_v60, %v715_v41 }
  0xd8   : > { %v723_v17 = vadd.f32 %v722_v2, %v721_v53  ;;  %v729_v18 = vadd.f32 %v728_v3, %v727_v54  ;;  %v735_v26 = vadd.f32 %v734_v10, %v733_v55  ;;  %v741_v27 = vadd.f32 %v740_v21, %v739_v56 }
  0xd9   : > { %v700_v33 = vrot.slane %v699_v12, 1  ;;  %v706_v61 = vrot.slane %v705_v7, 1  ;;  %v712_v43 = vrot.slane %v711_v32, 1  ;;  %v718_v62 = vrot.slane %v717_v8, 1 }
  0xda   : > { %v724_v35 = vrot.slane %v723_v17, 1  ;;  %v730_v36 = vrot.slane %v729_v18, 1  ;;  %v736_v63 = vrot.slane %v735_v26, 1  ;;  %v742_v1 = vrot.slane %v741_v27, 1 }
  0xdb   : > { %v701_v23 = vadd.f32 %v700_v33, %v699_v12  ;;  %v707_v14 = vadd.f32 %v706_v61, %v705_v7  ;;  %v713_v46 = vadd.f32 %v712_v43, %v711_v32  ;;  %v719_v9 = vadd.f32 %v718_v62, %v717_v8 }
  0xdc   : > { %v725_v4 = vadd.f32 %v724_v35, %v723_v17  ;;  %v731_v47 = vadd.f32 %v730_v36, %v729_v18  ;;  %v737_v24 = vadd.f32 %v736_v63, %v735_v26  ;;  %v743_v13 = vadd.f32 %v742_v1, %v741_v27 }
  0xdd   : > { %v1917_v37 = vadd.f32 %v701_v23, %v1876_v45  ;;  %v1920_v48 = vadd.f32 %v707_v14, %v1879_v15  ;;  %v1923_v38 = vadd.f32 %v713_v46, %v1882_v16  ;;  %v1926_v28 = vadd.f32 %v719_v9, %v1885_v30 }
  0xde   : > { %v1929_v49 = vadd.f32 %v725_v4, %v1897_v20  ;;  %v1932_v31 = vadd.f32 %v731_v47, %v1900_v22  ;;  %v1935_v50 = vadd.f32 %v737_v24, %v1903_v44  ;;  %v1938_v45 = vadd.f32 %v743_v13, %v1906_v25 }
  0xdf   : > { %v761_v15 = vunpack.c.h.bf16 %v1861_v34  ;;  %v762_v16 = vunpack.c.h.bf16 %v1864_v0  ;;  %v763_v40 = vunpack.c.h.bf16 %v1867_v29  ;;  %v764_v30 = vunpack.c.h.bf16 %v1870_v39 }
  0xe0   : > { %v765_v20 = vunpack.c.h.bf16 %v1873_v42  ;;  %v766_v51 = vunpack.c.h.bf16 %v1888_v5  ;;  %v767_v22 = vunpack.c.h.bf16 %v1891_v19  ;;  %v768_v44 = vunpack.c.h.bf16 %v1894_v6 }
  0xe1   : > { %v769_v11 = vrot.slane %v761_v15, 4  ;;  %v775_v52 = vrot.slane %v762_v16, 4  ;;  %v781_v25 = vrot.slane %v763_v40, 4  ;;  %v787_v41 = vrot.slane %v764_v30, 4 }
  0xe2   : > { %v793_v53 = vrot.slane %v765_v20, 4  ;;  %v799_v34 = vrot.slane %v766_v51, 4  ;;  %v805_v54 = vrot.slane %v767_v22, 4  ;;  %v811_v0 = vrot.slane %v768_v44, 4 }
  0xe3   : > { %v770_v55 = vadd.f32 %v769_v11, %v761_v15  ;;  %v776_v29 = vadd.f32 %v775_v52, %v762_v16  ;;  %v782_v56 = vadd.f32 %v781_v25, %v763_v40  ;;  %v788_v39 = vadd.f32 %v787_v41, %v764_v30 }
  0xe4   : > { %v794_v57 = vadd.f32 %v793_v53, %v765_v20  ;;  %v800_v42 = vadd.f32 %v799_v34, %v766_v51  ;;  %v806_v58 = vadd.f32 %v805_v54, %v767_v22  ;;  %v812_v5 = vadd.f32 %v811_v0, %v768_v44 }
  0xe5   : > { %v771_v19 = vrot.slane %v770_v55, 2  ;;  %v777_v59 = vrot.slane %v776_v29, 2  ;;  %v783_v6 = vrot.slane %v782_v56, 2  ;;  %v789_v60 = vrot.slane %v788_v39, 2 }
  0xe6   : > { %v795_v2 = vrot.slane %v794_v57, 2  ;;  %v801_v3 = vrot.slane %v800_v42, 2  ;;  %v807_v10 = vrot.slane %v806_v58, 2  ;;  %v813_v21 = vrot.slane %v812_v5, 2 }
  0xe7   : > { %v772_v12 = vadd.f32 %v771_v19, %v770_v55  ;;  %v778_v7 = vadd.f32 %v777_v59, %v776_v29  ;;  %v784_v32 = vadd.f32 %v783_v6, %v782_v56  ;;  %v790_v8 = vadd.f32 %v789_v60, %v788_v39 }
  0xe8   : > { %v796_v17 = vadd.f32 %v795_v2, %v794_v57  ;;  %v802_v18 = vadd.f32 %v801_v3, %v800_v42  ;;  %v808_v26 = vadd.f32 %v807_v10, %v806_v58  ;;  %v814_v27 = vadd.f32 %v813_v21, %v812_v5 }
  0xe9   : > { %v773_v33 = vrot.slane %v772_v12, 1  ;;  %v779_v61 = vrot.slane %v778_v7, 1  ;;  %v785_v43 = vrot.slane %v784_v32, 1  ;;  %v791_v62 = vrot.slane %v790_v8, 1 }
  0xea   : > { %v797_v35 = vrot.slane %v796_v17, 1  ;;  %v803_v36 = vrot.slane %v802_v18, 1  ;;  %v809_v63 = vrot.slane %v808_v26, 1  ;;  %v815_v1 = vrot.slane %v814_v27, 1 }
  0xeb   : > { %v774_v23 = vadd.f32 %v773_v33, %v772_v12  ;;  %v780_v14 = vadd.f32 %v779_v61, %v778_v7  ;;  %v786_v46 = vadd.f32 %v785_v43, %v784_v32  ;;  %v792_v9 = vadd.f32 %v791_v62, %v790_v8 }
  0xec   : > { %v798_v4 = vadd.f32 %v797_v35, %v796_v17  ;;  %v804_v47 = vadd.f32 %v803_v36, %v802_v18  ;;  %v810_v24 = vadd.f32 %v809_v63, %v808_v26  ;;  %v816_v13 = vadd.f32 %v815_v1, %v814_v27 }
  0xed   : > { %v817_v15 = vadd.f32 %v774_v23, %v1917_v37  ;;  %v818_v16 = vadd.f32 %v780_v14, %v1920_v48  ;;  %v819_v40 = vadd.f32 %v786_v46, %v1923_v38  ;;  %v820_v30 = vadd.f32 %v792_v9, %v1926_v28 }
  0xee   : > { %v821_v20 = vadd.f32 %v798_v4, %v1929_v49  ;;  %v822_v51 = vadd.f32 %v804_v47, %v1932_v31  ;;  %v823_v44 = vadd.f32 %v810_v24, %v1935_v50  ;;  %v824_v48 = vadd.f32 %v816_v13, %v1938_v45  ;;  %v1148_v50 = vld [vmem:[%s2017_s2] ss:$0 sm:$0xff] }
  0xef   : > { %v835_v22 = vsel %vm834_vm1, %v818_v16, %v817_v15 }
  0xf0   : > { %v837_v37 = vsel %vm836_vm2, %v819_v40, %v835_v22 }
  0xf1   : > { %v839_v38 = vsel %vm838_vm3, %v820_v30, %v837_v37 }
  0xf2   : > { %v841_v28 = vsel %vm840_vm4, %v821_v20, %v839_v38 }
  0xf3   : > { %v843_v49 = vsel %vm842_vm5, %v822_v51, %v841_v28 }
  0xf4   : > { %v845_v11 = vsel %vm844_vm6, %v823_v44, %v843_v49 }
  0xf5   : > { %v847_v52 = vsel %vm846_vm7, %v824_v48, %v845_v11 }
  0xf6   : > { %v855_v31 = vpack.c.bf16 %v847_v52, %v847_v52 }
  0xf8   : > { %1192 = vmatmul.mubr.bf16.vlgmr.msra.gmra.mrb[0].mxu0 %v855_v31 }
 0x1cb   : > { %v961_v45 = vpop.f32.mrb[0].mxu0 }
 0x1cc   : > { %v962_v25 = vadd.f32 %v1148_v50, %v961_v45  ;;  %v1193_v41 = vpop.f32.mrb[1].mxu0 }
 0x1cd   : > { %v964_v53 = vpop.f32.mrb[2].mxu0 }
 0x1ce   : > { %967 = vst [vmem:[%s228_s11] sm:$0xff] %v962_v25  ;;  %v1194_v34 = vpop.f32.mrb[3].mxu0 }
 0x1cf   : > { %1345 = shalt.err (!%p1342_p9)
}
 0x1d0   : > { %s1346_s8 = scalar_lea.hbm %s1966_s22, 128  ;;  %s1350_s4 = scalar_lea.hbm %s2018_s3, 256 }
 0x1d1   : > { %p1347_p2 = scmp.ne.s32.totalorder %s1966_s22, %s1346_s8  ;;  %p1351_p7 = scmp.lt.u32.totalorder %s1966_s22, %s2018_s3 }
 0x1d2   : > { %p1352_p5 = scmp.lt.u32.totalorder %s1350_s4, %s1346_s8  ;;  %p1354_p13 = scmp.lt.u32.totalorder %s1346_s8, %s1966_s22 }
 0x1d3   : > { %p1348_p6 = pnand %p1347_p2, %p2035_p12 }
 0x1d4   : > { %p1353_p10 = por %p1352_p5, %p1351_p7 }
 0x1d5   : > { %p1349_p0 = pneg %p1348_p6 }
 0x1d6   : > { %p1355_p1 = por %p1354_p13, %p1353_p10 }
 0x1d8   : > { %p1356_p11 = pnand %p1355_p1, %p1349_p0 }
 0x1da   : > { %1359 = shalt.err (!%p1356_p11)
}
 0x1db   : > { %1200 = dma.vmem_to_hbm [thread:$0]  (%p2035_p12), %s1968_s24, 128, %s1966_s22, %s969_s19  }
 0x1dc PF: > { %s994_s29 = sand.u32 1, %s1398_s12   ;;  %p2036_p4 = scmp.ne.s32.totalorder %s2028_s28, 0 }
 0x1dd   : > { %s995_s5 = scalar_lea.sflag [#allocation5], %s994_s29 }
 0x1de   : > { %p1207_p8 = pnand %p1077_p3, %p2036_p4 }
 0x1e0   : > { %1393 = dma.done.wait (!%p1207_p8), %s995_s5, 128  }
 0x1e1   : > { %1395 = vsyncadd (!%p1207_p8), %s995_s5, 4294967168  ;;  %s20_s17 = sadd.s32 1, %s1418_s17   ;;  %s2037_s12 = smov %s1402_s13 }
 0x1e2   : > { %p17_p9 = scmp.ge.s32.totalorder %s20_s17, 4   ;;  %s2038_s13 = smov %s1406_s14 }
 0x1e3   : > { %s2039_s14 = smov %s1511_s27  ;;  %s2040_s15 = smov %s1414_s16 }
 0x1e4   : > { %s2041_s16 = smov %s2043_s20  ;;  %19 = sbr.rel (!%p17_p9) target bundleno = 7 (0x7), region = 96 }
 0x1eb   :  { %1000 = vsyncpa [#allocation4], 1 }
 0x1ec   :  { %1002 = vsyncpa [#allocation4 + $0x1], 1 }
 0x1ed   :  { %1003 = vsyncpa [#allocation7], 1 }
 0x1ee   :  { %1004 = vsyncpa [#allocation5], 1 }
 0x1ef   :  { %1006 = vsyncpa [#allocation5 + $0x1], 1 }

</bundles_post_ra>
